<compile_context>
chip_gen: v5e
topology: v5e:2x2
jax: 0.10.0
libtpu: 0.0.40
codegen_flags: <defaults>
</compile_context>

<pallas_src>
import functools

import jax
import jax.numpy as jnp
from jax.experimental import pallas as pl
from jax.experimental.pallas import tpu as pltpu


def _gcn_fused_kernel(x_ref, adj_ref, *refs):
    """One grid step = full 5-layer GCN forward for ONE graph, all on-chip.

    refs = (w_1..w_L, b_1..b_L, out_ref). Weights are bf16, biases f32.
    """
    n_layers = (len(refs) - 1) // 2
    w_refs = refs[:n_layers]
    b_refs = refs[n_layers:2 * n_layers]
    out_ref = refs[-1]

    adj = adj_ref[...]                     # [N, N] bf16, loaded once per graph
    h = x_ref[...]                         # [N, nfeat] f32
    for li in range(n_layers):             # static unroll (Python int)
        w = w_refs[li][...]                # [f_in, f_out] bf16
        b = b_refs[li][...]                # [1, f_out] f32
        # support = h @ W  (MXU, bf16 in / f32 acc)
        support = jnp.dot(h.astype(jnp.bfloat16), w,
                          preferred_element_type=jnp.float32)
        # h = adj @ support + b (MXU + f32 VPU epilogue)
        h = jnp.dot(adj, support.astype(jnp.bfloat16),
                    preferred_element_type=jnp.float32) + b
        if li < n_layers - 1:              # ReLU on all but the last layer
            h = jnp.maximum(h, 0.0)
        # Dropout layers are identity (inference / training=False).
    out_ref[...] = h.astype(out_ref.dtype)


def gcn_forward_fused(x, adj_bf16, ws_bf16, bs):
    """Single pallas_call, grid over graphs; layers fused inside each step."""
    batch, n, nfeat = x.shape
    n_layers = len(ws_bf16)
    nclass = ws_bf16[-1].shape[1]

    in_specs = [
        pl.BlockSpec((None, n, nfeat), lambda b: (b, 0, 0)),   # x  [N, nfeat]
        pl.BlockSpec((None, n, n), lambda b: (b, 0, 0)),       # adj [N, N]
    ]
    # Weights/biases: whole-array blocks, same block for every grid step
    # (DMA'd into VMEM once, reused across graphs).
    in_specs += [pl.BlockSpec(w.shape, lambda b: (0, 0)) for w in ws_bf16]
    in_specs += [pl.BlockSpec(bv.shape, lambda b: (0, 0)) for bv in bs]
    out_spec = pl.BlockSpec((None, n, nclass), lambda b: (b, 0, 0))

    flops = sum(2 * batch * (n * w.shape[0] * w.shape[1] + n * n * w.shape[1])
                for w in ws_bf16)
    bytes_accessed = (x.size * x.dtype.itemsize
                      + adj_bf16.size * adj_bf16.dtype.itemsize
                      + sum(w.size * w.dtype.itemsize for w in ws_bf16)
                      + sum(bv.size * bv.dtype.itemsize for bv in bs)
                      + batch * n * nclass * 4)

    return pl.pallas_call(
        _gcn_fused_kernel,
        out_shape=jax.ShapeDtypeStruct((batch, n, nclass), jnp.float32),
        grid=(batch,),
        in_specs=in_specs,
        out_specs=out_spec,
        compiler_params=pltpu.CompilerParams(
            dimension_semantics=("parallel",),     # shard graphs across TCs (v7x)
            vmem_limit_bytes=32 * 1024 * 1024,     # explicit budget; re-derive if N grows
        ),
        cost_estimate=pl.CostEstimate(flops=flops, transcendentals=0,
                                      bytes_accessed=bytes_accessed),
    )(x, adj_bf16, *ws_bf16, *bs)


@jax.jit
def gcn_layer_5_forward(x, adj, ws, bs):
    """x: [B, N, nfeat] f32, adj: [B, N, N] f32, ws/bs: per-layer params."""
    adj_bf16 = adj.astype(jnp.bfloat16)                       # halves adj DMA/VMEM
    ws_bf16 = tuple(w.astype(jnp.bfloat16) for w in ws)       # MXU-native inputs
    return gcn_forward_fused(x, adj_bf16, ws_bf16, tuple(bs))


def init_gcn_params(key, nfeat, nhid, nclass, n_layers=5):
    """Mirrors GraphConvolution.reset_parameters: U(-stdv, stdv), stdv=1/sqrt(out)."""
    dims = [nfeat] + [nhid] * (n_layers - 1) + [nclass]
    ws, bs = [], []
    for li in range(n_layers):
        f_in, f_out = dims[li], dims[li + 1]
        key, kw, kb = jax.random.split(key, 3)
        stdv = 1.0 / float(f_out) ** 0.5
        ws.append(jax.random.uniform(kw, (f_in, f_out), jnp.float32, -stdv, stdv))
        bs.append(jax.random.uniform(kb, (1, f_out), jnp.float32, -stdv, stdv))
    return ws, bs


def reference_forward(x, adj, ws, bs, cast=lambda t: t):
    """Pure-JAX reference; `cast` lets us reproduce the kernel's bf16 inputs."""
    h = x
    adj_c = cast(adj)
    n_layers = len(ws)
    for li in range(n_layers):
        s = jnp.dot(cast(h), cast(ws[li]), preferred_element_type=jnp.float32)
        h = jnp.dot(adj_c, cast(s), preferred_element_type=jnp.float32) + bs[li]
        if li < n_layers - 1:
            h = jnp.maximum(h, 0.0)
    return h


if __name__ == "__main__":
    B, N, NFEAT, NHID, NCLASS = 2, 64, 32, 32, 16

    key = jax.random.PRNGKey(0)
    key, kx, ka = jax.random.split(key, 3)

    x = jax.random.normal(kx, (B, N, NFEAT), jnp.float32)

    # Symmetric, row-normalized adjacency per graph (typical GCN preprocessing).
    a = jax.random.uniform(ka, (B, N, N), jnp.float32)
    a = (a > 0.85).astype(jnp.float32)
    a = jnp.maximum(a, jnp.swapaxes(a, -1, -2)) + jnp.eye(N, dtype=jnp.float32)
    adj = a / jnp.sum(a, axis=-1, keepdims=True)

    ws, bs = init_gcn_params(key, NFEAT, NHID, NCLASS, n_layers=5)

    out = gcn_layer_5_forward(x, adj, tuple(ws), tuple(bs))
    out = jax.block_until_ready(out)
    assert out.shape == (B, N, NCLASS)

    cast_bf16 = lambda t: t.astype(jnp.bfloat16)
    for b in range(B):
        # Exact check vs. a reference using identical bf16-in / f32-acc math.
        ref_mixed = reference_forward(x[b], adj[b], ws, bs, cast=cast_bf16)
        assert jnp.allclose(out[b], ref_mixed, atol=5e-3, rtol=5e-3), \
            "mismatch vs mixed-precision reference"
        # Sanity check vs. the full-f32 reference (loose: bf16 MXU inputs).
        ref_f32 = reference_forward(x[b], adj[b], ws, bs)
        assert jnp.allclose(out[b], ref_f32, atol=1e-1, rtol=1e-1), \
            "mismatch vs f32 reference"

    print("KERNEL_OK")
</pallas_src>

<mosaic_0001>
module attributes {stable_mosaic.version = 11 : i64} {
  func.func @_gcn_fused_kernel(%arg0: i32, %arg1: memref<1x64x32xf32, #tpu.memory_space<vmem>>, %arg2: memref<1x64x64xbf16, #tpu.memory_space<vmem>>, %arg3: memref<32x32xbf16, #tpu.memory_space<vmem>>, %arg4: memref<32x32xbf16, #tpu.memory_space<vmem>>, %arg5: memref<32x32xbf16, #tpu.memory_space<vmem>>, %arg6: memref<32x32xbf16, #tpu.memory_space<vmem>>, %arg7: memref<32x16xbf16, #tpu.memory_space<vmem>>, %arg8: memref<1x32xf32, #tpu.memory_space<vmem>>, %arg9: memref<1x32xf32, #tpu.memory_space<vmem>>, %arg10: memref<1x32xf32, #tpu.memory_space<vmem>>, %arg11: memref<1x32xf32, #tpu.memory_space<vmem>>, %arg12: memref<1x16xf32, #tpu.memory_space<vmem>>, %arg13: memref<1x64x16xf32, #tpu.memory_space<vmem>>) attributes {dimension_semantics = [#tpu.dimension_semantics<parallel>], iteration_bounds = array<i64: 2>, scalar_prefetch = 0 : i64, scratch_operands = 0 : i64, tpu.core_type = #tpu.core_type<tc>, window_params = [{transform_indices = @transform_0, window_bounds = array<i64: 1, 64, 32>}, {transform_indices = @transform_1, window_bounds = array<i64: 1, 64, 64>}, {pipeline_mode = #tpu.pipeline_mode<synchronous>, transform_indices = @transform_2, window_bounds = array<i64: 32, 32>}, {pipeline_mode = #tpu.pipeline_mode<synchronous>, transform_indices = @transform_3, window_bounds = array<i64: 32, 32>}, {pipeline_mode = #tpu.pipeline_mode<synchronous>, transform_indices = @transform_4, window_bounds = array<i64: 32, 32>}, {pipeline_mode = #tpu.pipeline_mode<synchronous>, transform_indices = @transform_5, window_bounds = array<i64: 32, 32>}, {pipeline_mode = #tpu.pipeline_mode<synchronous>, transform_indices = @transform_6, window_bounds = array<i64: 32, 16>}, {pipeline_mode = #tpu.pipeline_mode<synchronous>, transform_indices = @transform_7, window_bounds = array<i64: 1, 32>}, {pipeline_mode = #tpu.pipeline_mode<synchronous>, transform_indices = @transform_8, window_bounds = array<i64: 1, 32>}, {pipeline_mode = #tpu.pipeline_mode<synchronous>, transform_indices = @transform_9, window_bounds = array<i64: 1, 32>}, {pipeline_mode = #tpu.pipeline_mode<synchronous>, transform_indices = @transform_10, window_bounds = array<i64: 1, 32>}, {pipeline_mode = #tpu.pipeline_mode<synchronous>, transform_indices = @transform_11, window_bounds = array<i64: 1, 16>}, {transform_indices = @transform_12, window_bounds = array<i64: 1, 64, 16>}]} {
    %c0 = arith.constant 0 : index
    %c0_0 = arith.constant 0 : index
    %c0_1 = arith.constant 0 : index
    %0 = vector.load %arg2[%c0, %c0_0, %c0_1] : memref<1x64x64xbf16, #tpu.memory_space<vmem>>, vector<1x64x64xbf16>
    %1 = vector.shape_cast %0 : vector<1x64x64xbf16> to vector<64x64xbf16>
    %c0_2 = arith.constant 0 : index
    %c0_3 = arith.constant 0 : index
    %c0_4 = arith.constant 0 : index
    %2 = vector.load %arg1[%c0_2, %c0_3, %c0_4] : memref<1x64x32xf32, #tpu.memory_space<vmem>>, vector<1x64x32xf32>
    %3 = vector.shape_cast %2 : vector<1x64x32xf32> to vector<64x32xf32>
    %c0_5 = arith.constant 0 : index
    %c0_6 = arith.constant 0 : index
    %4 = vector.load %arg3[%c0_5, %c0_6] : memref<32x32xbf16, #tpu.memory_space<vmem>>, vector<32x32xbf16>
    %c0_7 = arith.constant 0 : index
    %c0_8 = arith.constant 0 : index
    %5 = vector.load %arg8[%c0_7, %c0_8] : memref<1x32xf32, #tpu.memory_space<vmem>>, vector<1x32xf32>
    %6 = arith.truncf %3 : vector<64x32xf32> to vector<64x32xbf16>
    %cst = arith.constant dense<0.000000e+00> : vector<64x32xf32>
    %7 = tpu.matmul %6, %4, %cst {dimension_numbers = #tpu.dot_dimension_numbers<[1], [0], [0], [1], [0, 0, 1, 1], [], []>} : vector<64x32xbf16>, vector<32x32xbf16>, vector<64x32xf32> -> vector<64x32xf32>
    %8 = arith.truncf %7 : vector<64x32xf32> to vector<64x32xbf16>
    %cst_9 = arith.constant dense<0.000000e+00> : vector<64x32xf32>
    %9 = tpu.matmul %1, %8, %cst_9 {dimension_numbers = #tpu.dot_dimension_numbers<[1], [0], [0], [1], [0, 0, 1, 1], [], []>} : vector<64x64xbf16>, vector<64x32xbf16>, vector<64x32xf32> -> vector<64x32xf32>
    %10 = vector.broadcast %5 : vector<1x32xf32> to vector<64x32xf32>
    %11 = arith.addf %9, %10 : vector<64x32xf32>
    %cst_10 = arith.constant 0.000000e+00 : f32
    %12 = vector.broadcast %cst_10 : f32 to vector<64x32xf32>
    %13 = arith.maximumf %11, %12 : vector<64x32xf32>
    %c0_11 = arith.constant 0 : index
    %c0_12 = arith.constant 0 : index
    %14 = vector.load %arg4[%c0_11, %c0_12] : memref<32x32xbf16, #tpu.memory_space<vmem>>, vector<32x32xbf16>
    %c0_13 = arith.constant 0 : index
    %c0_14 = arith.constant 0 : index
    %15 = vector.load %arg9[%c0_13, %c0_14] : memref<1x32xf32, #tpu.memory_space<vmem>>, vector<1x32xf32>
    %16 = arith.truncf %13 : vector<64x32xf32> to vector<64x32xbf16>
    %cst_15 = arith.constant dense<0.000000e+00> : vector<64x32xf32>
    %17 = tpu.matmul %16, %14, %cst_15 {dimension_numbers = #tpu.dot_dimension_numbers<[1], [0], [0], [1], [0, 0, 1, 1], [], []>} : vector<64x32xbf16>, vector<32x32xbf16>, vector<64x32xf32> -> vector<64x32xf32>
    %18 = arith.truncf %17 : vector<64x32xf32> to vector<64x32xbf16>
    %cst_16 = arith.constant dense<0.000000e+00> : vector<64x32xf32>
    %19 = tpu.matmul %1, %18, %cst_16 {dimension_numbers = #tpu.dot_dimension_numbers<[1], [0], [0], [1], [0, 0, 1, 1], [], []>} : vector<64x64xbf16>, vector<64x32xbf16>, vector<64x32xf32> -> vector<64x32xf32>
    %20 = vector.broadcast %15 : vector<1x32xf32> to vector<64x32xf32>
    %21 = arith.addf %19, %20 : vector<64x32xf32>
    %cst_17 = arith.constant 0.000000e+00 : f32
    %22 = vector.broadcast %cst_17 : f32 to vector<64x32xf32>
    %23 = arith.maximumf %21, %22 : vector<64x32xf32>
    %c0_18 = arith.constant 0 : index
    %c0_19 = arith.constant 0 : index
    %24 = vector.load %arg5[%c0_18, %c0_19] : memref<32x32xbf16, #tpu.memory_space<vmem>>, vector<32x32xbf16>
    %c0_20 = arith.constant 0 : index
    %c0_21 = arith.constant 0 : index
    %25 = vector.load %arg10[%c0_20, %c0_21] : memref<1x32xf32, #tpu.memory_space<vmem>>, vector<1x32xf32>
    %26 = arith.truncf %23 : vector<64x32xf32> to vector<64x32xbf16>
    %cst_22 = arith.constant dense<0.000000e+00> : vector<64x32xf32>
    %27 = tpu.matmul %26, %24, %cst_22 {dimension_numbers = #tpu.dot_dimension_numbers<[1], [0], [0], [1], [0, 0, 1, 1], [], []>} : vector<64x32xbf16>, vector<32x32xbf16>, vector<64x32xf32> -> vector<64x32xf32>
    %28 = arith.truncf %27 : vector<64x32xf32> to vector<64x32xbf16>
    %cst_23 = arith.constant dense<0.000000e+00> : vector<64x32xf32>
    %29 = tpu.matmul %1, %28, %cst_23 {dimension_numbers = #tpu.dot_dimension_numbers<[1], [0], [0], [1], [0, 0, 1, 1], [], []>} : vector<64x64xbf16>, vector<64x32xbf16>, vector<64x32xf32> -> vector<64x32xf32>
    %30 = vector.broadcast %25 : vector<1x32xf32> to vector<64x32xf32>
    %31 = arith.addf %29, %30 : vector<64x32xf32>
    %cst_24 = arith.constant 0.000000e+00 : f32
    %32 = vector.broadcast %cst_24 : f32 to vector<64x32xf32>
    %33 = arith.maximumf %31, %32 : vector<64x32xf32>
    %c0_25 = arith.constant 0 : index
    %c0_26 = arith.constant 0 : index
    %34 = vector.load %arg6[%c0_25, %c0_26] : memref<32x32xbf16, #tpu.memory_space<vmem>>, vector<32x32xbf16>
    %c0_27 = arith.constant 0 : index
    %c0_28 = arith.constant 0 : index
    %35 = vector.load %arg11[%c0_27, %c0_28] : memref<1x32xf32, #tpu.memory_space<vmem>>, vector<1x32xf32>
    %36 = arith.truncf %33 : vector<64x32xf32> to vector<64x32xbf16>
    %cst_29 = arith.constant dense<0.000000e+00> : vector<64x32xf32>
    %37 = tpu.matmul %36, %34, %cst_29 {dimension_numbers = #tpu.dot_dimension_numbers<[1], [0], [0], [1], [0, 0, 1, 1], [], []>} : vector<64x32xbf16>, vector<32x32xbf16>, vector<64x32xf32> -> vector<64x32xf32>
    %38 = arith.truncf %37 : vector<64x32xf32> to vector<64x32xbf16>
    %cst_30 = arith.constant dense<0.000000e+00> : vector<64x32xf32>
    %39 = tpu.matmul %1, %38, %cst_30 {dimension_numbers = #tpu.dot_dimension_numbers<[1], [0], [0], [1], [0, 0, 1, 1], [], []>} : vector<64x64xbf16>, vector<64x32xbf16>, vector<64x32xf32> -> vector<64x32xf32>
    %40 = vector.broadcast %35 : vector<1x32xf32> to vector<64x32xf32>
    %41 = arith.addf %39, %40 : vector<64x32xf32>
    %cst_31 = arith.constant 0.000000e+00 : f32
    %42 = vector.broadcast %cst_31 : f32 to vector<64x32xf32>
    %43 = arith.maximumf %41, %42 : vector<64x32xf32>
    %c0_32 = arith.constant 0 : index
    %c0_33 = arith.constant 0 : index
    %44 = vector.load %arg7[%c0_32, %c0_33] : memref<32x16xbf16, #tpu.memory_space<vmem>>, vector<32x16xbf16>
    %c0_34 = arith.constant 0 : index
    %c0_35 = arith.constant 0 : index
    %45 = vector.load %arg12[%c0_34, %c0_35] : memref<1x16xf32, #tpu.memory_space<vmem>>, vector<1x16xf32>
    %46 = arith.truncf %43 : vector<64x32xf32> to vector<64x32xbf16>
    %cst_36 = arith.constant dense<0.000000e+00> : vector<64x16xf32>
    %47 = tpu.matmul %46, %44, %cst_36 {dimension_numbers = #tpu.dot_dimension_numbers<[1], [0], [0], [1], [0, 0, 1, 1], [], []>} : vector<64x32xbf16>, vector<32x16xbf16>, vector<64x16xf32> -> vector<64x16xf32>
    %48 = arith.truncf %47 : vector<64x16xf32> to vector<64x16xbf16>
    %cst_37 = arith.constant dense<0.000000e+00> : vector<64x16xf32>
    %49 = tpu.matmul %1, %48, %cst_37 {dimension_numbers = #tpu.dot_dimension_numbers<[1], [0], [0], [1], [0, 0, 1, 1], [], []>} : vector<64x64xbf16>, vector<64x16xbf16>, vector<64x16xf32> -> vector<64x16xf32>
    %50 = vector.broadcast %45 : vector<1x16xf32> to vector<64x16xf32>
    %51 = arith.addf %49, %50 : vector<64x16xf32>
    %c0_38 = arith.constant 0 : index
    %c0_39 = arith.constant 0 : index
    %c0_40 = arith.constant 0 : index
    %52 = vector.load %arg13[%c0_38, %c0_39, %c0_40] : memref<1x64x16xf32, #tpu.memory_space<vmem>>, vector<1x64x16xf32>
    %53 = vector.shape_cast %52 : vector<1x64x16xf32> to vector<64x16xf32>
    %54 = vector.shape_cast %51 : vector<64x16xf32> to vector<1x64x16xf32>
    tpu.vector_store %arg13[%c0_38, %c0_39, %c0_40], %54 {strides = array<i32>} : memref<1x64x16xf32, #tpu.memory_space<vmem>>, vector<1x64x16xf32>,
    return
  }
  func.func @transform_0(%arg0: i32) -> (i32, i32, i32) {
    %c0_i32 = arith.constant 0 : i32
    %c0_i32_0 = arith.constant 0 : i32
    %c0_i32_1 = arith.constant 0 : i32
    return %arg0, %c0_i32, %c0_i32_0 : i32, i32, i32
  }
  func.func @transform_1(%arg0: i32) -> (i32, i32, i32) {
    %c0_i32 = arith.constant 0 : i32
    %c0_i32_0 = arith.constant 0 : i32
    %c0_i32_1 = arith.constant 0 : i32
    return %arg0, %c0_i32, %c0_i32_0 : i32, i32, i32
  }
  func.func @transform_2(%arg0: i32) -> (i32, i32) {
    %c0_i32 = arith.constant 0 : i32
    %c0_i32_0 = arith.constant 0 : i32
    %c0_i32_1 = arith.constant 0 : i32
    return %c0_i32, %c0_i32_0 : i32, i32
  }
  func.func @transform_3(%arg0: i32) -> (i32, i32) {
    %c0_i32 = arith.constant 0 : i32
    %c0_i32_0 = arith.constant 0 : i32
    %c0_i32_1 = arith.constant 0 : i32
    return %c0_i32, %c0_i32_0 : i32, i32
  }
  func.func @transform_4(%arg0: i32) -> (i32, i32) {
    %c0_i32 = arith.constant 0 : i32
    %c0_i32_0 = arith.constant 0 : i32
    %c0_i32_1 = arith.constant 0 : i32
    return %c0_i32, %c0_i32_0 : i32, i32
  }
  func.func @transform_5(%arg0: i32) -> (i32, i32) {
    %c0_i32 = arith.constant 0 : i32
    %c0_i32_0 = arith.constant 0 : i32
    %c0_i32_1 = arith.constant 0 : i32
    return %c0_i32, %c0_i32_0 : i32, i32
  }
  func.func @transform_6(%arg0: i32) -> (i32, i32) {
    %c0_i32 = arith.constant 0 : i32
    %c0_i32_0 = arith.constant 0 : i32
    %c0_i32_1 = arith.constant 0 : i32
    return %c0_i32, %c0_i32_0 : i32, i32
  }
  func.func @transform_7(%arg0: i32) -> (i32, i32) {
    %c0_i32 = arith.constant 0 : i32
    %c0_i32_0 = arith.constant 0 : i32
    %c0_i32_1 = arith.constant 0 : i32
    return %c0_i32, %c0_i32_0 : i32, i32
  }
  func.func @transform_8(%arg0: i32) -> (i32, i32) {
    %c0_i32 = arith.constant 0 : i32
    %c0_i32_0 = arith.constant 0 : i32
    %c0_i32_1 = arith.constant 0 : i32
    return %c0_i32, %c0_i32_0 : i32, i32
  }
  func.func @transform_9(%arg0: i32) -> (i32, i32) {
    %c0_i32 = arith.constant 0 : i32
    %c0_i32_0 = arith.constant 0 : i32
    %c0_i32_1 = arith.constant 0 : i32
    return %c0_i32, %c0_i32_0 : i32, i32
  }
  func.func @transform_10(%arg0: i32) -> (i32, i32) {
    %c0_i32 = arith.constant 0 : i32
    %c0_i32_0 = arith.constant 0 : i32
    %c0_i32_1 = arith.constant 0 : i32
    return %c0_i32, %c0_i32_0 : i32, i32
  }
  func.func @transform_11(%arg0: i32) -> (i32, i32) {
    %c0_i32 = arith.constant 0 : i32
    %c0_i32_0 = arith.constant 0 : i32
    %c0_i32_1 = arith.constant 0 : i32
    return %c0_i32, %c0_i32_0 : i32, i32
  }
  func.func @transform_12(%arg0: i32) -> (i32, i32, i32) {
    %c0_i32 = arith.constant 0 : i32
    %c0_i32_0 = arith.constant 0 : i32
    %c0_i32_1 = arith.constant 0 : i32
    return %arg0, %c0_i32, %c0_i32_0 : i32, i32, i32
  }
}

</mosaic_0001>

<bundles_post_ra>
// kernel: gcn_layer_5_forward.1
= control target key start
LH: loop header
LB: loop body
LE: loop exit
PB: predicated region body
PF: predicated region fallthrough
CT: control target
= control target key end

     0   :  { %s1299_s21 = smov 0   ;;  %s1448_s0 = inlined_call_operand.vmem [shape: f32[2,64,32], index: 0, kind: input, shape index: {}]   ;;  %s1449_s1 = inlined_call_operand.vmem [shape: bf16[2,64,64], index: 1, kind: input, shape index: {}]   ;;  %s1450_s2 = inlined_call_operand.vmem [shape: bf16[32,32], index: 2, kind: input, shape index: {}]   ;;  %s1451_s3 = inlined_call_operand.vmem [shape: bf16[32,32], index: 3, kind: input, shape index: {}]   ;;  %s1452_s4 = inlined_call_operand.vmem [shape: bf16[32,32], index: 4, kind: input, shape index: {}]   ;;  %s1453_s5 = inlined_call_operand.vmem [shape: bf16[32,32], index: 5, kind: input, shape index: {}]   ;;  %s1454_s6 = inlined_call_operand.vmem [shape: bf16[32,16], index: 6, kind: input, shape index: {}]   ;;  %s1455_s7 = inlined_call_operand.vmem [shape: f32[1,32], index: 7, kind: input, shape index: {}]   ;;  %s1456_s8 = inlined_call_operand.vmem [shape: f32[1,32], index: 8, kind: input, shape index: {}]   ;;  %s1457_s9 = inlined_call_operand.vmem [shape: f32[1,32], index: 9, kind: input, shape index: {}]   ;;  %s1458_s10 = inlined_call_operand.vmem [shape: f32[1,32], index: 10, kind: input, shape index: {}]   ;;  %s1459_s11 = inlined_call_operand.vmem [shape: f32[1,16], index: 11, kind: input, shape index: {}]   ;;  %s1460_s12 = inlined_call_operand.vmem [shape: f32[2,64,16], index: 12, kind: output, shape index: {}]  }
   0x1 LB: > { %s1083_s22 = sadd.s32 4294967295, %s1232_s21   ;;  %p1087_p0 = scmp.ge.s32.totalorder %s1232_s21, 1  ;;  %s1232_s21 = sphi %s1299_s21, %s22_s21  }
   0x2   : > { %p372_p1 = scmp.lt.s32.totalorder %s1232_s21, 3 }
   0x4   : > { %p373_p2 = pnand %p1087_p0, %p372_p1 }
   0x5   : > { %p419_p3 = scmp.lt.s32.totalorder (!%p373_p2), %s1083_s22, 1 }
   0x6   : > { %376 = sbr.rel (%p373_p2) target bundleno = 1757 (0x6dd), region = 68 }
   0xb   : > { %v1200_v0 = vld [vmem:[%s1450_s2 + $0x8] sm:$0xff]  ;;  %v1199_v1 = vld [vmem:[%s1450_s2] sm:$0xff]  ;;  %s1462_s22 = smov (!%p419_p3, %s1083_s22), 1  ;;  %vm472_vm0 = vcmask 261120   ;;  %vm541_vm1 = vcmask 523264   ;;  %vm1007_vm2 = vcmask 130048  }
   0xc   : > { %491 = vmatpush.bf16.msra.mxu0 %v1200_v0  ;;  %1209 = vmatpush.bf16.msra.mxu1 %v1200_v0  ;;  %s1192_s27 = sshll.u32 %s1462_s22, 6  ;;  %s1193_s13 = sshll.u32 %s1462_s22, 5  ;;  %v1202_v30 = vld [vmem:[%s1451_s3 + $0x8] sm:$0xff]  ;;  %v1201_v31 = vld [vmem:[%s1451_s3] sm:$0xff] }
   0xd   : > { %s423_s30 = scalar_lea.vmem %s1448_s0, %s1192_s27  ;;  %s428_s16 = scalar_lea.vmem %s1449_s1, %s1193_s13  ;;  %630 = vmatpush.bf16.msra.mxu2 %v1202_v30  ;;  %1211 = vmatpush.bf16.msra.mxu3 %v1202_v30  ;;  %v1221_v33 = vld [vmem:[%s1455_s7] ss:$0 sm:$0xff] }
   0xe   : > { %v443_v2 = vld [vmem:[%s423_s30] sm:$0xff]  ;;  %v444_v3 = vld [vmem:[%s423_s30 + $0x8] sm:$0xff]  ;;  %v445_v8 = vld [vmem:[%s423_s30 + $0x10] sm:$0xff]  ;;  %s433_s15 = scalar_lea.vmem %s1460_s12, %s1192_s27 }
   0xf   : > { %v447_v4 = vld [vmem:[%s423_s30 + $0x20] sm:$0xff]  ;;  %v456_v5 = vpack.c.bf16 %v444_v3, %v443_v2  ;;  %v448_v6 = vld [vmem:[%s423_s30 + $0x28] sm:$0xff]  ;;  %v446_v9 = vld [vmem:[%s423_s30 + $0x18] sm:$0xff] }
  0x10   : > { %492 = vmatpush.bf16.msra.mxu0 %v1199_v1  ;;  %1210 = vmatpush.bf16.msra.mxu1 %v1199_v1  ;;  %v458_v7 = vpack.c.bf16 %v448_v6, %v447_v4  ;;  %v449_v10 = vld [vmem:[%s423_s30 + $0x30] sm:$0xff]  ;;  %v450_v11 = vld [vmem:[%s423_s30 + $0x38] sm:$0xff]  ;;  %v457_v12 = vpack.c.bf16 %v446_v9, %v445_v8  ;;  %v1329_v26 = vld [vmem:[%s428_s16] sm:$0xff] }
  0x11   : > { %v459_v13 = vpack.c.bf16 %v450_v11, %v449_v10  ;;  %v1333_v27 = vld [vmem:[%s428_s16 + $0x8] sm:$0xff]  ;;  %v1337_v28 = vld [vmem:[%s428_s16 + $0x10] sm:$0xff]  ;;  %v1341_v29 = vld [vmem:[%s428_s16 + $0x18] sm:$0xff]  ;;  %631 = vmatpush.bf16.msra.mxu2 %v1201_v31  ;;  %1212 = vmatpush.bf16.msra.mxu3 %v1201_v31 }
  0x12   : > { %v1204_v9 = vld [vmem:[%s1452_s4 + $0x8] sm:$0xff]  ;;  %v1203_v10 = vld [vmem:[%s1452_s4] sm:$0xff] }
  0x13   : > { %1102 = vmatmul.msk.bf16.vlgmr.msra.gmra.mxu0 %vm472_vm0, %v456_v5  ;;  %1104 = vmatmul.msk.bf16.vlgmr.msra.gmra.mxu1 %vm472_vm0, %v458_v7 }
  0x14   : > { %736 = vmatpush.bf16.msrb.mxu0 %v1204_v9 }
  0x18   : > { %737 = vmatpush.bf16.msrb.mxu0 %v1203_v10 }
  0x23   : > { %1103 = vmatmul.msk.bf16.gmra.mxu0 %vm472_vm0, %v457_v12  ;;  %1105 = vmatmul.msk.bf16.gmra.mxu1 %vm472_vm0, %v459_v13  ;;  %v1222_v12 = vld [vmem:[%s1456_s8] ss:$0 sm:$0xff] }
  0x90   : > { %v494_v14 = vpop.f32.mrf.mxu0  ;;  %v504_v15 = vpop.f32.mrf.mxu1 }
  0x98   : > { %v506_v16 = vpop.f32.mrf.mxu1  ;;  %v496_v17 = vpop.f32.mrf.mxu0 }
  0x99   : > { %v516_v22 = vpack.c.bf16 %v506_v16, %v504_v15  ;;  %v514_v25 = vpack.c.bf16 %v496_v17, %v494_v14 }
  0xa0   : > { %v509_v18 = vpop.f32.mrf.mxu1  ;;  %v499_v19 = vpop.f32.mrf.mxu0 }
  0xa8   : > { %v511_v20 = vpop.f32.mrf.mxu1  ;;  %v501_v23 = vpop.f32.mrf.mxu0 }
  0xa9   : > { %v517_v21 = vpack.c.bf16 %v511_v20, %v509_v18  ;;  %v515_v24 = vpack.c.bf16 %v501_v23, %v499_v19 }
  0xab   : > { %558 = vmatpush.bf16.msrb.mxu1 %v517_v21 }
  0xaf   : > { %559 = vmatpush.bf16.msrb.mxu1 %v516_v22 }
  0xb3   : > { %560 = vmatpush.bf16.msrb.mxu1 %v515_v24 }
  0xb7   : > { %561 = vmatpush.bf16.msrb.mxu1 %v514_v25 }
  0xba   : > { %1122 = vmatmul.msk.bf16.vlgmr.msrb.gmra.mxu1 %vm541_vm1, %v1329_v26 }
  0xca   : > { %1123 = vmatmul.msk.bf16.gmra.mxu1 %vm541_vm1, %v1333_v27 }
  0xda   : > { %1124 = vmatmul.msk.bf16.gmra.mxu1 %vm541_vm1, %v1337_v28 }
  0xea   : > { %1125 = vmatmul.msk.bf16.gmra.mxu1 %vm541_vm1, %v1341_v29 }
 0x137   : > { %v563_v32 = vpop.f32.mrf.mxu1 }
 0x138   : > { %v564_v34 = vadd.f32 %v1221_v33, %v563_v32 }
 0x13a   : > { %v583_v37 = vmax.f32 %v564_v34, 0.0 }
 0x13f   : > { %v565_v35 = vpop.f32.mrf.mxu1 }
 0x140   : > { %v566_v36 = vadd.f32 %v1221_v33, %v565_v35 }
 0x142   : > { %v584_v38 = vmax.f32 %v566_v36, 0.0 }
 0x144   : > { %v596_v39 = vpack.c.bf16 %v584_v38, %v583_v37 }
 0x146   : > { %1134 = vmatmul.msk.bf16.vlgmr.msra.gmra.mxu2 %vm472_vm0, %v596_v39 }
 0x147   : > { %v568_v40 = vpop.f32.mrf.mxu1 }
 0x148   : > { %v569_v41 = vadd.f32 %v1221_v33, %v568_v40 }
 0x14a   : > { %v585_v44 = vmax.f32 %v569_v41, 0.0 }
 0x14f   : > { %v570_v42 = vpop.f32.mrf.mxu1 }
 0x150   : > { %v571_v43 = vadd.f32 %v1221_v33, %v570_v42 }
 0x152   : > { %v586_v45 = vmax.f32 %v571_v43, 0.0 }
 0x154   : > { %v597_v46 = vpack.c.bf16 %v586_v45, %v585_v44 }
 0x156   : > { %1135 = vmatmul.msk.bf16.gmra.mxu2 %vm472_vm0, %v597_v46 }
 0x157   : > { %v573_v47 = vpop.f32.mrf.mxu1 }
 0x158   : > { %v574_v48 = vadd.f32 %v1221_v33, %v573_v47 }
 0x15a   : > { %v587_v51 = vmax.f32 %v574_v48, 0.0 }
 0x15f   : > { %v575_v49 = vpop.f32.mrf.mxu1 }
 0x160   : > { %v576_v50 = vadd.f32 %v1221_v33, %v575_v49 }
 0x162   : > { %v588_v52 = vmax.f32 %v576_v50, 0.0 }
 0x164   : > { %v598_v53 = vpack.c.bf16 %v588_v52, %v587_v51 }
 0x166   : > { %1136 = vmatmul.msk.bf16.vlgmr.msra.gmra.mxu3 %vm472_vm0, %v598_v53 }
 0x167   : > { %v578_v54 = vpop.f32.mrf.mxu1 }
 0x168   : > { %v579_v55 = vadd.f32 %v1221_v33, %v578_v54 }
 0x16a   : > { %v589_v58 = vmax.f32 %v579_v55, 0.0 }
 0x16f   : > { %v580_v56 = vpop.f32.mrf.mxu1 }
 0x170   : > { %v581_v57 = vadd.f32 %v1221_v33, %v580_v56  ;;  %v1206_v56 = vld [vmem:[%s1453_s5 + $0x8] sm:$0xff] }
 0x171   : > { %842 = vmatpush.bf16.msra.mxu1 %v1206_v56 }
 0x172   : > { %v590_v59 = vmax.f32 %v581_v57, 0.0  ;;  %v1205_v57 = vld [vmem:[%s1453_s5] sm:$0xff] }
 0x174   : > { %v599_v60 = vpack.c.bf16 %v590_v59, %v589_v58  ;;  %v1223_v59 = vld [vmem:[%s1457_s9] ss:$0 sm:$0xff] }
 0x175   : > { %843 = vmatpush.bf16.msra.mxu1 %v1205_v57 }
 0x176   : > { %1137 = vmatmul.msk.bf16.gmra.mxu3 %vm472_vm0, %v599_v60 }
 0x1c9   : > { %v633_v61 = vpop.f32.mrf.mxu2 }
 0x1d1   : > { %v635_v0 = vpop.f32.mrf.mxu2 }
 0x1d2   : > { %v653_v8 = vpack.c.bf16 %v635_v0, %v633_v61 }
 0x1d9   : > { %v638_v2 = vpop.f32.mrf.mxu2 }
 0x1e1   : > { %v640_v6 = vpop.f32.mrf.mxu2 }
 0x1e2   : > { %v654_v7 = vpack.c.bf16 %v640_v6, %v638_v2 }
 0x1e9   : > { %v643_v62 = vpop.f32.mrf.mxu3 }
 0x1f1   : > { %v645_v63 = vpop.f32.mrf.mxu3 }
 0x1f2   : > { %v655_v5 = vpack.c.bf16 %v645_v63, %v643_v62 }
 0x1f9   : > { %v648_v1 = vpop.f32.mrf.mxu3 }
 0x201   : > { %v650_v3 = vpop.f32.mrf.mxu3 }
 0x202   : > { %v656_v4 = vpack.c.bf16 %v650_v3, %v648_v1 }
 0x204   : > { %664 = vmatpush.bf16.msrb.mxu3 %v656_v4 }
 0x208   : > { %665 = vmatpush.bf16.msrb.mxu3 %v655_v5 }
 0x20c   : > { %666 = vmatpush.bf16.msrb.mxu3 %v654_v7 }
 0x210   : > { %667 = vmatpush.bf16.msrb.mxu3 %v653_v8 }
 0x213   : > { %1138 = vmatmul.msk.bf16.vlgmr.msrb.gmra.mxu3 %vm541_vm1, %v1329_v26 }
 0x223   : > { %1139 = vmatmul.msk.bf16.gmra.mxu3 %vm541_vm1, %v1333_v27 }
 0x233   : > { %1140 = vmatmul.msk.bf16.gmra.mxu3 %vm541_vm1, %v1337_v28 }
 0x243   : > { %1141 = vmatmul.msk.bf16.gmra.mxu3 %vm541_vm1, %v1341_v29 }
 0x296   : > { %v669_v11 = vpop.f32.mrf.mxu3 }
 0x297   : > { %v670_v13 = vadd.f32 %v1222_v12, %v669_v11 }
 0x299   : > { %v689_v16 = vmax.f32 %v670_v13, 0.0 }
 0x29e   : > { %v671_v14 = vpop.f32.mrf.mxu3 }
 0x29f   : > { %v672_v15 = vadd.f32 %v1222_v12, %v671_v14 }
 0x2a1   : > { %v690_v17 = vmax.f32 %v672_v15, 0.0 }
 0x2a3   : > { %v702_v18 = vpack.c.bf16 %v690_v17, %v689_v16 }
 0x2a5   : > { %1150 = vmatmul.msk.bf16.vlgmr.msrb.gmra.mxu0 %vm472_vm0, %v702_v18 }
 0x2a6   : > { %v674_v19 = vpop.f32.mrf.mxu3 }
 0x2a7   : > { %v675_v20 = vadd.f32 %v1222_v12, %v674_v19 }
 0x2a9   : > { %v691_v23 = vmax.f32 %v675_v20, 0.0 }
 0x2ae   : > { %v676_v21 = vpop.f32.mrf.mxu3 }
 0x2af   : > { %v677_v22 = vadd.f32 %v1222_v12, %v676_v21 }
 0x2b1   : > { %v692_v24 = vmax.f32 %v677_v22, 0.0 }
 0x2b3   : > { %v703_v25 = vpack.c.bf16 %v692_v24, %v691_v23 }
 0x2b5   : > { %1151 = vmatmul.msk.bf16.gmra.mxu0 %vm472_vm0, %v703_v25 }
 0x2b6   : > { %v679_v30 = vpop.f32.mrf.mxu3 }
 0x2b7   : > { %v680_v31 = vadd.f32 %v1222_v12, %v679_v30 }
 0x2b9   : > { %v693_v34 = vmax.f32 %v680_v31, 0.0 }
 0x2be   : > { %v681_v32 = vpop.f32.mrf.mxu3 }
 0x2bf   : > { %v682_v33 = vadd.f32 %v1222_v12, %v681_v32 }
 0x2c1   : > { %v694_v35 = vmax.f32 %v682_v33, 0.0 }
 0x2c3   : > { %v704_v36 = vpack.c.bf16 %v694_v35, %v693_v34 }
 0x2c5   : > { %1152 = vmatmul.msk.bf16.gmra.mxu0 %vm472_vm0, %v704_v36 }
 0x2c6   : > { %v684_v37 = vpop.f32.mrf.mxu3 }
 0x2c7   : > { %v685_v38 = vadd.f32 %v1222_v12, %v684_v37 }
 0x2c9   : > { %v695_v41 = vmax.f32 %v685_v38, 0.0 }
 0x2ce   : > { %v686_v39 = vpop.f32.mrf.mxu3 }
 0x2cf   : > { %v687_v40 = vadd.f32 %v1222_v12, %v686_v39  ;;  %v1208_v39 = vld [vmem:[%s1454_s6 + $0x8] sm:$0xff] }
 0x2d0   : > { %948 = vmatpush.bf16.msra.mxu0 %v1208_v39 }
 0x2d1   : > { %v696_v42 = vmax.f32 %v687_v40, 0.0  ;;  %v1207_v40 = vld [vmem:[%s1454_s6] sm:$0xff] }
 0x2d3   : > { %v705_v43 = vpack.c.bf16 %v696_v42, %v695_v41  ;;  %v1224_v42 = vld [vmem:[%s1458_s10] ss:$0 sm:$0xff] }
 0x2d4   : > { %949 = vmatpush.bf16.msra.mxu0 %v1207_v40 }
 0x2d5   : > { %1153 = vmatmul.msk.bf16.gmra.mxu0 %vm472_vm0, %v705_v43 }
 0x322   : > { %v739_v44 = vpop.f32.mrf.mxu0 }
 0x32a   : > { %v741_v45 = vpop.f32.mrf.mxu0 }
 0x32b   : > { %v759_v55 = vpack.c.bf16 %v741_v45, %v739_v44 }
 0x332   : > { %v744_v46 = vpop.f32.mrf.mxu0 }
 0x33a   : > { %v746_v47 = vpop.f32.mrf.mxu0 }
 0x33b   : > { %v760_v54 = vpack.c.bf16 %v746_v47, %v744_v46 }
 0x342   : > { %v749_v48 = vpop.f32.mrf.mxu0 }
 0x34a   : > { %v751_v49 = vpop.f32.mrf.mxu0 }
 0x34b   : > { %v761_v53 = vpack.c.bf16 %v751_v49, %v749_v48 }
 0x352   : > { %v754_v50 = vpop.f32.mrf.mxu0 }
 0x35a   : > { %v756_v51 = vpop.f32.mrf.mxu0 }
 0x35b   : > { %v762_v52 = vpack.c.bf16 %v756_v51, %v754_v50 }
 0x35d   : > { %770 = vmatpush.bf16.msrb.mxu2 %v762_v52 }
 0x361   : > { %771 = vmatpush.bf16.msrb.mxu2 %v761_v53 }
 0x365   : > { %772 = vmatpush.bf16.msrb.mxu2 %v760_v54 }
 0x369   : > { %773 = vmatpush.bf16.msrb.mxu2 %v759_v55 }
 0x36c   : > { %1154 = vmatmul.msk.bf16.vlgmr.msrb.gmra.mxu2 %vm541_vm1, %v1329_v26 }
 0x37c   : > { %1155 = vmatmul.msk.bf16.gmra.mxu2 %vm541_vm1, %v1333_v27 }
 0x38c   : > { %1156 = vmatmul.msk.bf16.gmra.mxu2 %vm541_vm1, %v1337_v28 }
 0x39c   : > { %1157 = vmatmul.msk.bf16.gmra.mxu2 %vm541_vm1, %v1341_v29 }
 0x3ef   : > { %v775_v58 = vpop.f32.mrf.mxu2 }
 0x3f0   : > { %v776_v60 = vadd.f32 %v1223_v59, %v775_v58 }
 0x3f2   : > { %v795_v63 = vmax.f32 %v776_v60, 0.0 }
 0x3f7   : > { %v777_v61 = vpop.f32.mrf.mxu2 }
 0x3f8   : > { %v778_v62 = vadd.f32 %v1223_v59, %v777_v61 }
 0x3fa   : > { %v796_v0 = vmax.f32 %v778_v62, 0.0 }
 0x3fc   : > { %v808_v1 = vpack.c.bf16 %v796_v0, %v795_v63 }
 0x3fe   : > { %1166 = vmatmul.msk.bf16.vlgmr.msra.gmra.mxu1 %vm472_vm0, %v808_v1 }
 0x3ff   : > { %v780_v2 = vpop.f32.mrf.mxu2 }
 0x400   : > { %v781_v3 = vadd.f32 %v1223_v59, %v780_v2 }
 0x402   : > { %v797_v6 = vmax.f32 %v781_v3, 0.0 }
 0x407   : > { %v782_v4 = vpop.f32.mrf.mxu2 }
 0x408   : > { %v783_v5 = vadd.f32 %v1223_v59, %v782_v4 }
 0x40a   : > { %v798_v7 = vmax.f32 %v783_v5, 0.0 }
 0x40c   : > { %v809_v8 = vpack.c.bf16 %v798_v7, %v797_v6 }
 0x40e   : > { %1167 = vmatmul.msk.bf16.gmra.mxu1 %vm472_vm0, %v809_v8 }
 0x40f   : > { %v785_v9 = vpop.f32.mrf.mxu2 }
 0x410   : > { %v786_v10 = vadd.f32 %v1223_v59, %v785_v9 }
 0x412   : > { %v799_v13 = vmax.f32 %v786_v10, 0.0 }
 0x417   : > { %v787_v11 = vpop.f32.mrf.mxu2 }
 0x418   : > { %v788_v12 = vadd.f32 %v1223_v59, %v787_v11 }
 0x41a   : > { %v800_v14 = vmax.f32 %v788_v12, 0.0 }
 0x41c   : > { %v810_v15 = vpack.c.bf16 %v800_v14, %v799_v13 }
 0x41e   : > { %1168 = vmatmul.msk.bf16.gmra.mxu1 %vm472_vm0, %v810_v15 }
 0x41f   : > { %v790_v16 = vpop.f32.mrf.mxu2 }
 0x420   : > { %v791_v17 = vadd.f32 %v1223_v59, %v790_v16 }
 0x422   : > { %v801_v20 = vmax.f32 %v791_v17, 0.0 }
 0x427   : > { %v792_v18 = vpop.f32.mrf.mxu2 }
 0x428   : > { %v793_v19 = vadd.f32 %v1223_v59, %v792_v18  ;;  %v1225_v18 = vld [vmem:[%s1459_s11] ss:$0 sm:$0xff] }
 0x42a   : > { %v802_v21 = vmax.f32 %v793_v19, 0.0 }
 0x42c   : > { %v811_v22 = vpack.c.bf16 %v802_v21, %v801_v20 }
 0x42e   : > { %1169 = vmatmul.msk.bf16.gmra.mxu1 %vm472_vm0, %v811_v22 }
 0x47b   : > { %v845_v23 = vpop.f32.mrf.mxu1 }
 0x483   : > { %v847_v24 = vpop.f32.mrf.mxu1 }
 0x484   : > { %v865_v38 = vpack.c.bf16 %v847_v24, %v845_v23 }
 0x48b   : > { %v850_v25 = vpop.f32.mrf.mxu1 }
 0x493   : > { %v852_v30 = vpop.f32.mrf.mxu1 }
 0x494   : > { %v866_v37 = vpack.c.bf16 %v852_v30, %v850_v25 }
 0x49b   : > { %v855_v31 = vpop.f32.mrf.mxu1 }
 0x4a3   : > { %v857_v32 = vpop.f32.mrf.mxu1 }
 0x4a4   : > { %v867_v36 = vpack.c.bf16 %v857_v32, %v855_v31 }
 0x4ab   : > { %v860_v33 = vpop.f32.mrf.mxu1 }
 0x4b3   : > { %v862_v34 = vpop.f32.mrf.mxu1 }
 0x4b4   : > { %v868_v35 = vpack.c.bf16 %v862_v34, %v860_v33 }
 0x4b6   : > { %876 = vmatpush.bf16.msra.mxu3 %v868_v35 }
 0x4ba   : > { %877 = vmatpush.bf16.msra.mxu3 %v867_v36 }
 0x4be   : > { %878 = vmatpush.bf16.msra.mxu3 %v866_v37 }
 0x4c2   : > { %879 = vmatpush.bf16.msra.mxu3 %v865_v38 }
 0x4c5   : > { %1170 = vmatmul.msk.bf16.vlgmr.msra.gmra.mxu3 %vm541_vm1, %v1329_v26 }
 0x4d5   : > { %1171 = vmatmul.msk.bf16.gmra.mxu3 %vm541_vm1, %v1333_v27 }
 0x4e5   : > { %1172 = vmatmul.msk.bf16.gmra.mxu3 %vm541_vm1, %v1337_v28 }
 0x4f5   : > { %1173 = vmatmul.msk.bf16.gmra.mxu3 %vm541_vm1, %v1341_v29 }
 0x548   : > { %v881_v41 = vpop.f32.mrf.mxu3 }
 0x549   : > { %v882_v43 = vadd.f32 %v1224_v42, %v881_v41 }
 0x54b   : > { %v901_v46 = vmax.f32 %v882_v43, 0.0 }
 0x550   : > { %v883_v44 = vpop.f32.mrf.mxu3 }
 0x551   : > { %v884_v45 = vadd.f32 %v1224_v42, %v883_v44 }
 0x553   : > { %v902_v47 = vmax.f32 %v884_v45, 0.0 }
 0x555   : > { %v914_v48 = vpack.c.bf16 %v902_v47, %v901_v46 }
 0x557   : > { %1182 = vmatmul.msk.bf16.vlgmr.msra.gmra.mxu0 %vm472_vm0, %v914_v48 }
 0x558   : > { %v886_v49 = vpop.f32.mrf.mxu3 }
 0x559   : > { %v887_v50 = vadd.f32 %v1224_v42, %v886_v49 }
 0x55b   : > { %v903_v53 = vmax.f32 %v887_v50, 0.0 }
 0x560   : > { %v888_v51 = vpop.f32.mrf.mxu3 }
 0x561   : > { %v889_v52 = vadd.f32 %v1224_v42, %v888_v51 }
 0x563   : > { %v904_v54 = vmax.f32 %v889_v52, 0.0 }
 0x565   : > { %v915_v55 = vpack.c.bf16 %v904_v54, %v903_v53 }
 0x567   : > { %1183 = vmatmul.msk.bf16.gmra.mxu0 %vm472_vm0, %v915_v55 }
 0x568   : > { %v891_v56 = vpop.f32.mrf.mxu3 }
 0x569   : > { %v892_v57 = vadd.f32 %v1224_v42, %v891_v56 }
 0x56b   : > { %v905_v60 = vmax.f32 %v892_v57, 0.0 }
 0x570   : > { %v893_v58 = vpop.f32.mrf.mxu3 }
 0x571   : > { %v894_v59 = vadd.f32 %v1224_v42, %v893_v58 }
 0x573   : > { %v906_v61 = vmax.f32 %v894_v59, 0.0 }
 0x575   : > { %v916_v62 = vpack.c.bf16 %v906_v61, %v905_v60 }
 0x577   : > { %1184 = vmatmul.msk.bf16.gmra.mxu0 %vm472_vm0, %v916_v62 }
 0x578   : > { %v896_v63 = vpop.f32.mrf.mxu3 }
 0x579   : > { %v897_v0 = vadd.f32 %v1224_v42, %v896_v63 }
 0x57b   : > { %v907_v3 = vmax.f32 %v897_v0, 0.0 }
 0x580   : > { %v898_v1 = vpop.f32.mrf.mxu3 }
 0x581   : > { %v899_v2 = vadd.f32 %v1224_v42, %v898_v1 }
 0x583   : > { %v908_v4 = vmax.f32 %v899_v2, 0.0 }
 0x585   : > { %v917_v5 = vpack.c.bf16 %v908_v4, %v907_v3 }
 0x587   : > { %1185 = vmatmul.msk.bf16.gmra.mxu0 %vm472_vm0, %v917_v5 }
 0x5d4   : > { %v951_v6 = vpop.f32.mrf.mxu0 }
 0x5dc   : > { %v953_v7 = vpop.f32.mrf.mxu0 }
 0x5dd   : > { %v971_v17 = vpack.c.bf16 %v953_v7, %v951_v6 }
 0x5e4   : > { %v956_v8 = vpop.f32.mrf.mxu0 }
 0x5ec   : > { %v958_v9 = vpop.f32.mrf.mxu0 }
 0x5ed   : > { %v972_v16 = vpack.c.bf16 %v958_v9, %v956_v8 }
 0x5f4   : > { %v961_v10 = vpop.f32.mrf.mxu0 }
 0x5fc   : > { %v963_v11 = vpop.f32.mrf.mxu0 }
 0x5fd   : > { %v973_v15 = vpack.c.bf16 %v963_v11, %v961_v10 }
 0x604   : > { %v966_v12 = vpop.f32.mrf.mxu0 }
 0x60c   : > { %v968_v13 = vpop.f32.mrf.mxu0 }
 0x60d   : > { %v974_v14 = vpack.c.bf16 %v968_v13, %v966_v12 }
 0x60f   : > { %982 = vmatpush.bf16.msra.mxu2 %v974_v14 }
 0x613   : > { %983 = vmatpush.bf16.msra.mxu2 %v973_v15 }
 0x617   : > { %984 = vmatpush.bf16.msra.mxu2 %v972_v16 }
 0x61b   : > { %985 = vmatpush.bf16.msra.mxu2 %v971_v17 }
 0x61e   : > { %1186 = vmatmul.msk.bf16.vlgmr.msra.gmra.mxu2 %vm541_vm1, %v1329_v26 }
 0x62e   : > { %1187 = vmatmul.msk.bf16.gmra.mxu2 %vm541_vm1, %v1333_v27 }
 0x63e   : > { %1188 = vmatmul.msk.bf16.gmra.mxu2 %vm541_vm1, %v1337_v28 }
 0x64e   : > { %1189 = vmatmul.msk.bf16.gmra.mxu2 %vm541_vm1, %v1341_v29 }
 0x6a1   : > { %v987_v19 = vpop.f32.mrf.mxu2 }
 0x6a2   : > { %v988_v26 = vadd.f32 %v1225_v18, %v987_v19 }
 0x6a4   : > { %1008 = vst.msk [vmem:[%s433_s15] sm:$0xff] %vm1007_vm2, %v988_v26 }
 0x6a9   : > { %v989_v27 = vpop.f32.mrf.mxu2 }
 0x6aa   : > { %v990_v20 = vadd.f32 %v1225_v18, %v989_v27 }
 0x6ac   : > { %1009 = vst.msk [vmem:[%s433_s15 + $0x8] sm:$0xff] %vm1007_vm2, %v990_v20 }
 0x6b1   : > { %v992_v28 = vpop.f32.mrf.mxu2 }
 0x6b2   : > { %v993_v29 = vadd.f32 %v1225_v18, %v992_v28 }
 0x6b4   : > { %1010 = vst.msk [vmem:[%s433_s15 + $0x10] sm:$0xff] %vm1007_vm2, %v993_v29 }
 0x6b9   : > { %v994_v21 = vpop.f32.mrf.mxu2 }
 0x6ba   : > { %v995_v22 = vadd.f32 %v1225_v18, %v994_v21 }
 0x6bc   : > { %1011 = vst.msk [vmem:[%s433_s15 + $0x18] sm:$0xff] %vm1007_vm2, %v995_v22 }
 0x6c1   : > { %v997_v23 = vpop.f32.mrf.mxu2 }
 0x6c2   : > { %v998_v24 = vadd.f32 %v1225_v18, %v997_v23 }
 0x6c4   : > { %1012 = vst.msk [vmem:[%s433_s15 + $0x20] sm:$0xff] %vm1007_vm2, %v998_v24 }
 0x6c9   : > { %v999_v25 = vpop.f32.mrf.mxu2 }
 0x6ca   : > { %v1000_v30 = vadd.f32 %v1225_v18, %v999_v25 }
 0x6cc   : > { %1013 = vst.msk [vmem:[%s433_s15 + $0x28] sm:$0xff] %vm1007_vm2, %v1000_v30 }
 0x6d1   : > { %v1002_v31 = vpop.f32.mrf.mxu2 }
 0x6d2   : > { %v1003_v32 = vadd.f32 %v1225_v18, %v1002_v31 }
 0x6d4   : > { %1014 = vst.msk [vmem:[%s433_s15 + $0x30] sm:$0xff] %vm1007_vm2, %v1003_v32 }
 0x6d9   : > { %v1004_v33 = vpop.f32.mrf.mxu2 }
 0x6da   : > { %v1005_v34 = vadd.f32 %v1225_v18, %v1004_v33 }
 0x6dc   : > { %1015 = vst.msk [vmem:[%s433_s15 + $0x38] sm:$0xff] %vm1007_vm2, %v1005_v34 }
 0x6dd PF: > { %s22_s21 = sadd.s32 1, %s1232_s21  }
 0x6de   : > { %p19_p4 = scmp.ge.s32.totalorder %s22_s21, 4  }
 0x6e0   :  { %21 = sbr.rel (!%p19_p4) target bundleno = 1 (0x1), region = 101 }

</bundles_post_ra>
